<compile_context>
chip_gen: v5e
topology: v5e:2x2
jax: 0.10.0
libtpu: 0.0.40
codegen_flags: <defaults>
</compile_context>

<pallas_src>
import jax
import jax.numpy as jnp
from jax import lax
from jax.experimental import pallas as pl
from jax.experimental.pallas import tpu as pltpu


_VMEM_LIMIT_BYTES = 32 * 1024 * 1024  # safe on v5e/v6e/v7x for the tiles below


def _round_up(n, m):
    return ((n + m - 1) // m) * m


def _lma_fwd_kernel(x_ref, inv_ref, beta_ref, o_ref, carry_sc):
    """Forward cumulative average + residual on one (T_BLK, B, C_BLK) chunk.

    x_ref:    (T_BLK, B, C_BLK)   input chunk
    inv_ref:  (T_BLK, B, 1) f32   precomputed 1 / cumsum(mask)
    beta_ref: (1, C_BLK)          per-channel residual scale
    o_ref:    (T_BLK, B, C_BLK)   output chunk
    carry_sc: (B, C_BLK) f32      running cumsum(x), carried across time chunks
    """
    t_chunk = pl.program_id(1)

    @pl.when(t_chunk == 0)
    def _():
        carry_sc[...] = jnp.zeros_like(carry_sc)

    beta = beta_ref[...].astype(jnp.float32)          # (1, C_BLK), loaded once
    t_blk = x_ref.shape[0]

    def body(t, carry):
        xt = x_ref[t].astype(jnp.float32)             # (B, C_BLK)
        carry = carry + xt                            # cumsum(x, dim=0)[t]
        out = carry * inv_ref[t] + xt * beta          # fwd/fwdp + x*beta
        o_ref[t] = out.astype(o_ref.dtype)
        return carry

    unroll = t_blk if t_blk <= 16 else 8
    carry_sc[...] = lax.fori_loop(0, t_blk, body, carry_sc[...], unroll=unroll)


def _lma_bwd_kernel(x_ref, inv_ref, acc_ref, o_ref, carry_sc):
    """Reverse cumulative average, accumulated onto acc (the forward result).

    Time chunks are visited last-to-first via the index_map and rows are
    walked bottom-up inside the chunk, so no jnp.flip is ever materialized.
    acc_ref is aliased with o_ref's HBM buffer (input_output_aliases).
    """
    t_chunk = pl.program_id(1)

    @pl.when(t_chunk == 0)
    def _():
        carry_sc[...] = jnp.zeros_like(carry_sc)

    t_blk = x_ref.shape[0]

    def body(i, carry):
        r = t_blk - 1 - i
        xt = x_ref[r].astype(jnp.float32)             # (B, C_BLK)
        carry = carry + xt                            # reverse cumsum(x)
        out = acc_ref[r].astype(jnp.float32) + carry * inv_ref[r]
        o_ref[r] = out.astype(o_ref.dtype)
        return carry

    unroll = t_blk if t_blk <= 16 else 8
    carry_sc[...] = lax.fori_loop(0, t_blk, body, carry_sc[...], unroll=unroll)


def _fwd_pass(x_p, inv_p, beta_p, t_blk, c_blk):
    T_pad, B_pad, C_pad = x_p.shape
    n_tb = T_pad // t_blk
    n_cb = C_pad // c_blk
    return pl.pallas_call(
        _lma_fwd_kernel,
        out_shape=jax.ShapeDtypeStruct((T_pad, B_pad, C_pad), x_p.dtype),
        grid_spec=pltpu.PrefetchScalarGridSpec(
            num_scalar_prefetch=0,
            grid=(n_cb, n_tb),
            in_specs=[
                pl.BlockSpec((t_blk, B_pad, c_blk), lambda c, t: (t, 0, c)),
                pl.BlockSpec((t_blk, B_pad, 1), lambda c, t: (t, 0, 0)),
                pl.BlockSpec((1, c_blk), lambda c, t: (0, c)),
            ],
            out_specs=pl.BlockSpec((t_blk, B_pad, c_blk), lambda c, t: (t, 0, c)),
            scratch_shapes=[pltpu.VMEM((B_pad, c_blk), jnp.float32)],
        ),
        compiler_params=pltpu.CompilerParams(
            dimension_semantics=("parallel", "arbitrary"),
            vmem_limit_bytes=_VMEM_LIMIT_BYTES,
        ),
    )(x_p, inv_p, beta_p)


def _bwd_pass(x_p, inv_p, acc_p, t_blk, c_blk):
    T_pad, B_pad, C_pad = x_p.shape
    n_tb = T_pad // t_blk
    n_cb = C_pad // c_blk
    rev = lambda t: n_tb - 1 - t          # visit time chunks last -> first
    return pl.pallas_call(
        _lma_bwd_kernel,
        out_shape=jax.ShapeDtypeStruct((T_pad, B_pad, C_pad), x_p.dtype),
        grid_spec=pltpu.PrefetchScalarGridSpec(
            num_scalar_prefetch=0,
            grid=(n_cb, n_tb),
            in_specs=[
                pl.BlockSpec((t_blk, B_pad, c_blk), lambda c, t: (rev(t), 0, c)),
                pl.BlockSpec((t_blk, B_pad, 1), lambda c, t: (rev(t), 0, 0)),
                pl.BlockSpec((t_blk, B_pad, c_blk), lambda c, t: (rev(t), 0, c)),
            ],
            out_specs=pl.BlockSpec(
                (t_blk, B_pad, c_blk), lambda c, t: (rev(t), 0, c)),
            scratch_shapes=[pltpu.VMEM((B_pad, c_blk), jnp.float32)],
        ),
        compiler_params=pltpu.CompilerParams(
            dimension_semantics=("parallel", "arbitrary"),
            vmem_limit_bytes=_VMEM_LIMIT_BYTES,
        ),
        input_output_aliases={2: 0},      # acc (fwd result) aliased with output
    )(x_p, inv_p, acc_p)


def lma_forward(x, beta, padding_mask=None, bidirectional=False,
                t_blk_max=128, c_blk_max=512):
    """LMALayer.forward.

    x:            (T, B, C) float
    beta:         (C,) float                 (the nn.Parameter)
    padding_mask: (B, T) optional, 1 = pad   (ByteTensor in PyTorch)
    """
    T, B, C = x.shape

    if padding_mask is not None:
        # mask = 1.0 - padding_mask.float().transpose(0, 1)  -> (T, B)
        mask = 1.0 - padding_mask.astype(jnp.float32).T
    else:
        # PyTorch uses ones(T, 1); ones(T, B) is numerically identical.
        mask = jnp.ones((T, B), jnp.float32)

    # Precompute the reciprocal count off the serial in-kernel carry chain.
    # NOTE: matches PyTorch — all-pad-from-t=0 (left padding) gives inf/nan.
    inv_fwd = 1.0 / jnp.cumsum(mask, axis=0)                 # (T, B)

    # TPU-friendly padded layout: B -> full sublanes (x8), C -> full lanes (x128)
    B_pad = _round_up(B, 8)
    c_al = _round_up(C, 128)
    c_blk = min(c_blk_max, c_al)
    C_pad = _round_up(c_al, c_blk)
    # keep each block ~<= 4 MiB so double-buffered in+out fits the VMEM budget
    row_bytes = B_pad * c_blk * 4
    t_fit = max(8, (4 * 1024 * 1024) // row_bytes)
    t_blk = int(min(t_blk_max, t_fit, _round_up(T, 8)))
    T_pad = _round_up(T, t_blk)

    pads = ((0, T_pad - T), (0, B_pad - B), (0, C_pad - C))
    needs_pad = any(p[1] for p in pads)
    x_p = jnp.pad(x, pads) if needs_pad else x               # zeros: inert in cumsum
    inv_fwd_p = jnp.pad(inv_fwd, pads[:2], constant_values=1.0)[:, :, None]
    beta_p = jnp.pad(beta, (0, C_pad - C)).reshape(1, C_pad)

    out_p = _fwd_pass(x_p, inv_fwd_p, beta_p, t_blk, c_blk)

    if bidirectional:
        # backward contribution at time t: (sum_{s>=t} x[s]) / (sum_{s>=t} mask[s]),
        # fused into the forward result in place (aliased output, no flips).
        inv_bwd = 1.0 / jnp.cumsum(mask[::-1], axis=0)[::-1]  # (T, B)
        inv_bwd_p = jnp.pad(inv_bwd, pads[:2], constant_values=1.0)[:, :, None]
        out_p = _bwd_pass(x_p, inv_bwd_p, out_p, t_blk, c_blk)

    return out_p[:T, :B, :C] if needs_pad else out_p


def lma_reference(x, beta, padding_mask=None, bidirectional=False):
    """Pure-JAX reference mirroring the PyTorch module exactly."""
    residual = x * beta
    if padding_mask is not None:
        mask = 1.0 - padding_mask.astype(jnp.float32).T       # (T, B)
    else:
        mask = jnp.ones((x.shape[0], 1), jnp.float32)         # (T, 1)
    fwd = jnp.cumsum(x, axis=0)
    fwdp = jnp.cumsum(mask, axis=0)
    out = fwd / fwdp[..., None]
    if bidirectional:
        bwd = jnp.cumsum(jnp.flip(x, 0), axis=0)
        m2 = jnp.flip(mask, 0) if padding_mask is not None else mask
        bwdp = jnp.cumsum(m2, axis=0)
        out = out + jnp.flip(bwd / bwdp[..., None], 0)
    return out + residual


# TODO(synk): incremental_state (decode-time buffer append) is inference
# plumbing outside the forward math and is not implemented here.

if __name__ == "__main__":
    T, B, C = 8, 2, 32  # seq=8, batch=2, embed_dim=32

    key = jax.random.PRNGKey(0)
    kx, kb = jax.random.split(key)
    x = jax.random.normal(kx, (T, B, C), dtype=jnp.float32)
    # beta ~ N(0, 1), matching nn.init.normal_(self.beta, mean=0.0, std=1.0)
    beta = jax.random.normal(kb, (C,), dtype=jnp.float32)

    # padding mask: (B, T), 1s mark padding; pad the tail of batch element 1
    padding_mask = jnp.zeros((B, T), dtype=jnp.int32)
    padding_mask = padding_mask.at[1, T - 2:].set(1)

    # unidirectional (module default)
    out = lma_forward(x, beta, padding_mask=padding_mask, bidirectional=False)
    out = jax.block_until_ready(out)
    ref = lma_reference(x, beta, padding_mask=padding_mask, bidirectional=False)
    assert out.shape == (T, B, C) and out.dtype == x.dtype
    assert jnp.allclose(out, ref, atol=1e-5, rtol=1e-5), "fwd mismatch vs reference"

    # bidirectional path (reversed index_maps + aliased accumulate)
    out_bi = lma_forward(x, beta, padding_mask=padding_mask, bidirectional=True)
    out_bi = jax.block_until_ready(out_bi)
    ref_bi = lma_reference(x, beta, padding_mask=padding_mask, bidirectional=True)
    assert jnp.allclose(out_bi, ref_bi, atol=1e-5, rtol=1e-5), "bidir mismatch vs reference"

    print("KERNEL_OK")
</pallas_src>

<mosaic_0001>
module attributes {stable_mosaic.version = 11 : i64} {
  func.func @_lma_fwd_kernel(%arg0: i32, %arg1: i32, %arg2: memref<8x8x128xf32, #tpu.memory_space<vmem>>, %arg3: memref<8x8x1xf32, #tpu.memory_space<vmem>>, %arg4: memref<1x128xf32, #tpu.memory_space<vmem>>, %arg5: memref<8x8x128xf32, #tpu.memory_space<vmem>>, %arg6: memref<8x128xf32, #tpu.memory_space<vmem>>) attributes {dimension_semantics = [#tpu.dimension_semantics<parallel>, #tpu.dimension_semantics<arbitrary>], iteration_bounds = array<i64: 1, 1>, scalar_prefetch = 0 : i64, scratch_operands = 1 : i64, tpu.core_type = #tpu.core_type<tc>, window_params = [{transform_indices = @transform_0, window_bounds = array<i64: 8, 8, 128>}, {transform_indices = @transform_1, window_bounds = array<i64: 8, 8, 1>}, {transform_indices = @transform_2, window_bounds = array<i64: 1, 128>}, {transform_indices = @transform_3, window_bounds = array<i64: 8, 8, 128>}]} {
    %c0_i32 = arith.constant 0 : i32
    %0 = arith.cmpi eq, %arg1, %c0_i32 : i32
    %1 = arith.extui %0 : i1 to i32
    %c0_i32_0 = arith.constant 0 : i32
    %2 = arith.cmpi ne, %1, %c0_i32_0 : i32
    scf.if %2 {
      %cst = arith.constant 0.000000e+00 : f32
      %134 = vector.broadcast %cst : f32 to vector<8x128xf32>
      %c0_55 = arith.constant 0 : index
      %c0_56 = arith.constant 0 : index
      %135 = vector.load %arg6[%c0_55, %c0_56] : memref<8x128xf32, #tpu.memory_space<vmem>>, vector<8x128xf32>
      tpu.vector_store %arg6[%c0_55, %c0_56], %134 {strides = array<i32>} : memref<8x128xf32, #tpu.memory_space<vmem>>, vector<8x128xf32>,
    } else {
    }
    %c0 = arith.constant 0 : index
    %c0_1 = arith.constant 0 : index
    %3 = vector.load %arg4[%c0, %c0_1] : memref<1x128xf32, #tpu.memory_space<vmem>>, vector<1x128xf32>
    %c0_2 = arith.constant 0 : index
    %c0_3 = arith.constant 0 : index
    %4 = vector.load %arg6[%c0_2, %c0_3] : memref<8x128xf32, #tpu.memory_space<vmem>>, vector<8x128xf32>
    %c0_i32_4 = arith.constant 0 : i32
    %5 = arith.index_cast %c0_i32_4 : i32 to index
    %c0_5 = arith.constant 0 : index
    %c0_6 = arith.constant 0 : index
    %6 = vector.load %arg2[%5, %c0_5, %c0_6] : memref<8x8x128xf32, #tpu.memory_space<vmem>>, vector<1x8x128xf32>
    %7 = vector.shape_cast %6 : vector<1x8x128xf32> to vector<8x128xf32>
    %8 = arith.addf %4, %7 : vector<8x128xf32>
    %9 = arith.index_cast %c0_i32_4 : i32 to index
    %c0_7 = arith.constant 0 : index
    %c0_8 = arith.constant 0 : index
    %10 = vector.load %arg3[%9, %c0_7, %c0_8] : memref<8x8x1xf32, #tpu.memory_space<vmem>>, vector<1x8x1xf32>
    %11 = vector.shape_cast %10 : vector<1x8x1xf32> to vector<8x1xf32>
    %12 = vector.broadcast %11 : vector<8x1xf32> to vector<8x128xf32>
    %13 = arith.mulf %8, %12 : vector<8x128xf32>
    %14 = vector.broadcast %3 : vector<1x128xf32> to vector<8x128xf32>
    %15 = arith.mulf %7, %14 : vector<8x128xf32>
    %16 = arith.addf %13, %15 : vector<8x128xf32>
    %17 = arith.index_cast %c0_i32_4 : i32 to index
    %c0_9 = arith.constant 0 : index
    %c0_10 = arith.constant 0 : index
    %18 = vector.load %arg5[%17, %c0_9, %c0_10] : memref<8x8x128xf32, #tpu.memory_space<vmem>>, vector<1x8x128xf32>
    %19 = vector.shape_cast %18 : vector<1x8x128xf32> to vector<8x128xf32>
    %20 = vector.shape_cast %16 : vector<8x128xf32> to vector<1x8x128xf32>
    tpu.vector_store %arg5[%17, %c0_9, %c0_10], %20 {strides = array<i32>} : memref<8x8x128xf32, #tpu.memory_space<vmem>>, vector<1x8x128xf32>,
    %c1_i32 = arith.constant 1 : i32
    %21 = arith.index_cast %c1_i32 : i32 to index
    %c0_11 = arith.constant 0 : index
    %c0_12 = arith.constant 0 : index
    %22 = vector.load %arg2[%21, %c0_11, %c0_12] : memref<8x8x128xf32, #tpu.memory_space<vmem>>, vector<1x8x128xf32>
    %23 = vector.shape_cast %22 : vector<1x8x128xf32> to vector<8x128xf32>
    %24 = arith.addf %8, %23 : vector<8x128xf32>
    %25 = arith.index_cast %c1_i32 : i32 to index
    %c0_13 = arith.constant 0 : index
    %c0_14 = arith.constant 0 : index
    %26 = vector.load %arg3[%25, %c0_13, %c0_14] : memref<8x8x1xf32, #tpu.memory_space<vmem>>, vector<1x8x1xf32>
    %27 = vector.shape_cast %26 : vector<1x8x1xf32> to vector<8x1xf32>
    %28 = vector.broadcast %27 : vector<8x1xf32> to vector<8x128xf32>
    %29 = arith.mulf %24, %28 : vector<8x128xf32>
    %30 = vector.broadcast %3 : vector<1x128xf32> to vector<8x128xf32>
    %31 = arith.mulf %23, %30 : vector<8x128xf32>
    %32 = arith.addf %29, %31 : vector<8x128xf32>
    %33 = arith.index_cast %c1_i32 : i32 to index
    %c0_15 = arith.constant 0 : index
    %c0_16 = arith.constant 0 : index
    %34 = vector.load %arg5[%33, %c0_15, %c0_16] : memref<8x8x128xf32, #tpu.memory_space<vmem>>, vector<1x8x128xf32>
    %35 = vector.shape_cast %34 : vector<1x8x128xf32> to vector<8x128xf32>
    %36 = vector.shape_cast %32 : vector<8x128xf32> to vector<1x8x128xf32>
    tpu.vector_store %arg5[%33, %c0_15, %c0_16], %36 {strides = array<i32>} : memref<8x8x128xf32, #tpu.memory_space<vmem>>, vector<1x8x128xf32>,
    %c2_i32 = arith.constant 2 : i32
    %37 = arith.index_cast %c2_i32 : i32 to index
    %c0_17 = arith.constant 0 : index
    %c0_18 = arith.constant 0 : index
    %38 = vector.load %arg2[%37, %c0_17, %c0_18] : memref<8x8x128xf32, #tpu.memory_space<vmem>>, vector<1x8x128xf32>
    %39 = vector.shape_cast %38 : vector<1x8x128xf32> to vector<8x128xf32>
    %40 = arith.addf %24, %39 : vector<8x128xf32>
    %41 = arith.index_cast %c2_i32 : i32 to index
    %c0_19 = arith.constant 0 : index
    %c0_20 = arith.constant 0 : index
    %42 = vector.load %arg3[%41, %c0_19, %c0_20] : memref<8x8x1xf32, #tpu.memory_space<vmem>>, vector<1x8x1xf32>
    %43 = vector.shape_cast %42 : vector<1x8x1xf32> to vector<8x1xf32>
    %44 = vector.broadcast %43 : vector<8x1xf32> to vector<8x128xf32>
    %45 = arith.mulf %40, %44 : vector<8x128xf32>
    %46 = vector.broadcast %3 : vector<1x128xf32> to vector<8x128xf32>
    %47 = arith.mulf %39, %46 : vector<8x128xf32>
    %48 = arith.addf %45, %47 : vector<8x128xf32>
    %49 = arith.index_cast %c2_i32 : i32 to index
    %c0_21 = arith.constant 0 : index
    %c0_22 = arith.constant 0 : index
    %50 = vector.load %arg5[%49, %c0_21, %c0_22] : memref<8x8x128xf32, #tpu.memory_space<vmem>>, vector<1x8x128xf32>
    %51 = vector.shape_cast %50 : vector<1x8x128xf32> to vector<8x128xf32>
    %52 = vector.shape_cast %48 : vector<8x128xf32> to vector<1x8x128xf32>
    tpu.vector_store %arg5[%49, %c0_21, %c0_22], %52 {strides = array<i32>} : memref<8x8x128xf32, #tpu.memory_space<vmem>>, vector<1x8x128xf32>,
    %c3_i32 = arith.constant 3 : i32
    %53 = arith.index_cast %c3_i32 : i32 to index
    %c0_23 = arith.constant 0 : index
    %c0_24 = arith.constant 0 : index
    %54 = vector.load %arg2[%53, %c0_23, %c0_24] : memref<8x8x128xf32, #tpu.memory_space<vmem>>, vector<1x8x128xf32>
    %55 = vector.shape_cast %54 : vector<1x8x128xf32> to vector<8x128xf32>
    %56 = arith.addf %40, %55 : vector<8x128xf32>
    %57 = arith.index_cast %c3_i32 : i32 to index
    %c0_25 = arith.constant 0 : index
    %c0_26 = arith.constant 0 : index
    %58 = vector.load %arg3[%57, %c0_25, %c0_26] : memref<8x8x1xf32, #tpu.memory_space<vmem>>, vector<1x8x1xf32>
    %59 = vector.shape_cast %58 : vector<1x8x1xf32> to vector<8x1xf32>
    %60 = vector.broadcast %59 : vector<8x1xf32> to vector<8x128xf32>
    %61 = arith.mulf %56, %60 : vector<8x128xf32>
    %62 = vector.broadcast %3 : vector<1x128xf32> to vector<8x128xf32>
    %63 = arith.mulf %55, %62 : vector<8x128xf32>
    %64 = arith.addf %61, %63 : vector<8x128xf32>
    %65 = arith.index_cast %c3_i32 : i32 to index
    %c0_27 = arith.constant 0 : index
    %c0_28 = arith.constant 0 : index
    %66 = vector.load %arg5[%65, %c0_27, %c0_28] : memref<8x8x128xf32, #tpu.memory_space<vmem>>, vector<1x8x128xf32>
    %67 = vector.shape_cast %66 : vector<1x8x128xf32> to vector<8x128xf32>
    %68 = vector.shape_cast %64 : vector<8x128xf32> to vector<1x8x128xf32>
    tpu.vector_store %arg5[%65, %c0_27, %c0_28], %68 {strides = array<i32>} : memref<8x8x128xf32, #tpu.memory_space<vmem>>, vector<1x8x128xf32>,
    %c4_i32 = arith.constant 4 : i32
    %69 = arith.index_cast %c4_i32 : i32 to index
    %c0_29 = arith.constant 0 : index
    %c0_30 = arith.constant 0 : index
    %70 = vector.load %arg2[%69, %c0_29, %c0_30] : memref<8x8x128xf32, #tpu.memory_space<vmem>>, vector<1x8x128xf32>
    %71 = vector.shape_cast %70 : vector<1x8x128xf32> to vector<8x128xf32>
    %72 = arith.addf %56, %71 : vector<8x128xf32>
    %73 = arith.index_cast %c4_i32 : i32 to index
    %c0_31 = arith.constant 0 : index
    %c0_32 = arith.constant 0 : index
    %74 = vector.load %arg3[%73, %c0_31, %c0_32] : memref<8x8x1xf32, #tpu.memory_space<vmem>>, vector<1x8x1xf32>
    %75 = vector.shape_cast %74 : vector<1x8x1xf32> to vector<8x1xf32>
    %76 = vector.broadcast %75 : vector<8x1xf32> to vector<8x128xf32>
    %77 = arith.mulf %72, %76 : vector<8x128xf32>
    %78 = vector.broadcast %3 : vector<1x128xf32> to vector<8x128xf32>
    %79 = arith.mulf %71, %78 : vector<8x128xf32>
    %80 = arith.addf %77, %79 : vector<8x128xf32>
    %81 = arith.index_cast %c4_i32 : i32 to index
    %c0_33 = arith.constant 0 : index
    %c0_34 = arith.constant 0 : index
    %82 = vector.load %arg5[%81, %c0_33, %c0_34] : memref<8x8x128xf32, #tpu.memory_space<vmem>>, vector<1x8x128xf32>
    %83 = vector.shape_cast %82 : vector<1x8x128xf32> to vector<8x128xf32>
    %84 = vector.shape_cast %80 : vector<8x128xf32> to vector<1x8x128xf32>
    tpu.vector_store %arg5[%81, %c0_33, %c0_34], %84 {strides = array<i32>} : memref<8x8x128xf32, #tpu.memory_space<vmem>>, vector<1x8x128xf32>,
    %c5_i32 = arith.constant 5 : i32
    %85 = arith.index_cast %c5_i32 : i32 to index
    %c0_35 = arith.constant 0 : index
    %c0_36 = arith.constant 0 : index
    %86 = vector.load %arg2[%85, %c0_35, %c0_36] : memref<8x8x128xf32, #tpu.memory_space<vmem>>, vector<1x8x128xf32>
    %87 = vector.shape_cast %86 : vector<1x8x128xf32> to vector<8x128xf32>
    %88 = arith.addf %72, %87 : vector<8x128xf32>
    %89 = arith.index_cast %c5_i32 : i32 to index
    %c0_37 = arith.constant 0 : index
    %c0_38 = arith.constant 0 : index
    %90 = vector.load %arg3[%89, %c0_37, %c0_38] : memref<8x8x1xf32, #tpu.memory_space<vmem>>, vector<1x8x1xf32>
    %91 = vector.shape_cast %90 : vector<1x8x1xf32> to vector<8x1xf32>
    %92 = vector.broadcast %91 : vector<8x1xf32> to vector<8x128xf32>
    %93 = arith.mulf %88, %92 : vector<8x128xf32>
    %94 = vector.broadcast %3 : vector<1x128xf32> to vector<8x128xf32>
    %95 = arith.mulf %87, %94 : vector<8x128xf32>
    %96 = arith.addf %93, %95 : vector<8x128xf32>
    %97 = arith.index_cast %c5_i32 : i32 to index
    %c0_39 = arith.constant 0 : index
    %c0_40 = arith.constant 0 : index
    %98 = vector.load %arg5[%97, %c0_39, %c0_40] : memref<8x8x128xf32, #tpu.memory_space<vmem>>, vector<1x8x128xf32>
    %99 = vector.shape_cast %98 : vector<1x8x128xf32> to vector<8x128xf32>
    %100 = vector.shape_cast %96 : vector<8x128xf32> to vector<1x8x128xf32>
    tpu.vector_store %arg5[%97, %c0_39, %c0_40], %100 {strides = array<i32>} : memref<8x8x128xf32, #tpu.memory_space<vmem>>, vector<1x8x128xf32>,
    %c6_i32 = arith.constant 6 : i32
    %101 = arith.index_cast %c6_i32 : i32 to index
    %c0_41 = arith.constant 0 : index
    %c0_42 = arith.constant 0 : index
    %102 = vector.load %arg2[%101, %c0_41, %c0_42] : memref<8x8x128xf32, #tpu.memory_space<vmem>>, vector<1x8x128xf32>
    %103 = vector.shape_cast %102 : vector<1x8x128xf32> to vector<8x128xf32>
    %104 = arith.addf %88, %103 : vector<8x128xf32>
    %105 = arith.index_cast %c6_i32 : i32 to index
    %c0_43 = arith.constant 0 : index
    %c0_44 = arith.constant 0 : index
    %106 = vector.load %arg3[%105, %c0_43, %c0_44] : memref<8x8x1xf32, #tpu.memory_space<vmem>>, vector<1x8x1xf32>
    %107 = vector.shape_cast %106 : vector<1x8x1xf32> to vector<8x1xf32>
    %108 = vector.broadcast %107 : vector<8x1xf32> to vector<8x128xf32>
    %109 = arith.mulf %104, %108 : vector<8x128xf32>
    %110 = vector.broadcast %3 : vector<1x128xf32> to vector<8x128xf32>
    %111 = arith.mulf %103, %110 : vector<8x128xf32>
    %112 = arith.addf %109, %111 : vector<8x128xf32>
    %113 = arith.index_cast %c6_i32 : i32 to index
    %c0_45 = arith.constant 0 : index
    %c0_46 = arith.constant 0 : index
    %114 = vector.load %arg5[%113, %c0_45, %c0_46] : memref<8x8x128xf32, #tpu.memory_space<vmem>>, vector<1x8x128xf32>
    %115 = vector.shape_cast %114 : vector<1x8x128xf32> to vector<8x128xf32>
    %116 = vector.shape_cast %112 : vector<8x128xf32> to vector<1x8x128xf32>
    tpu.vector_store %arg5[%113, %c0_45, %c0_46], %116 {strides = array<i32>} : memref<8x8x128xf32, #tpu.memory_space<vmem>>, vector<1x8x128xf32>,
    %c7_i32 = arith.constant 7 : i32
    %117 = arith.index_cast %c7_i32 : i32 to index
    %c0_47 = arith.constant 0 : index
    %c0_48 = arith.constant 0 : index
    %118 = vector.load %arg2[%117, %c0_47, %c0_48] : memref<8x8x128xf32, #tpu.memory_space<vmem>>, vector<1x8x128xf32>
    %119 = vector.shape_cast %118 : vector<1x8x128xf32> to vector<8x128xf32>
    %120 = arith.addf %104, %119 : vector<8x128xf32>
    %121 = arith.index_cast %c7_i32 : i32 to index
    %c0_49 = arith.constant 0 : index
    %c0_50 = arith.constant 0 : index
    %122 = vector.load %arg3[%121, %c0_49, %c0_50] : memref<8x8x1xf32, #tpu.memory_space<vmem>>, vector<1x8x1xf32>
    %123 = vector.shape_cast %122 : vector<1x8x1xf32> to vector<8x1xf32>
    %124 = vector.broadcast %123 : vector<8x1xf32> to vector<8x128xf32>
    %125 = arith.mulf %120, %124 : vector<8x128xf32>
    %126 = vector.broadcast %3 : vector<1x128xf32> to vector<8x128xf32>
    %127 = arith.mulf %119, %126 : vector<8x128xf32>
    %128 = arith.addf %125, %127 : vector<8x128xf32>
    %129 = arith.index_cast %c7_i32 : i32 to index
    %c0_51 = arith.constant 0 : index
    %c0_52 = arith.constant 0 : index
    %130 = vector.load %arg5[%129, %c0_51, %c0_52] : memref<8x8x128xf32, #tpu.memory_space<vmem>>, vector<1x8x128xf32>
    %131 = vector.shape_cast %130 : vector<1x8x128xf32> to vector<8x128xf32>
    %132 = vector.shape_cast %128 : vector<8x128xf32> to vector<1x8x128xf32>
    tpu.vector_store %arg5[%129, %c0_51, %c0_52], %132 {strides = array<i32>} : memref<8x8x128xf32, #tpu.memory_space<vmem>>, vector<1x8x128xf32>,
    %c8_i32 = arith.constant 8 : i32
    %c0_53 = arith.constant 0 : index
    %c0_54 = arith.constant 0 : index
    %133 = vector.load %arg6[%c0_53, %c0_54] : memref<8x128xf32, #tpu.memory_space<vmem>>, vector<8x128xf32>
    tpu.vector_store %arg6[%c0_53, %c0_54], %120 {strides = array<i32>} : memref<8x128xf32, #tpu.memory_space<vmem>>, vector<8x128xf32>,
    return
  }
  func.func @transform_0(%arg0: i32, %arg1: i32) -> (i32, i32, i32) {
    %c0_i32 = arith.constant 0 : i32
    %c0_i32_0 = arith.constant 0 : i32
    return %arg1, %c0_i32, %arg0 : i32, i32, i32
  }
  func.func @transform_1(%arg0: i32, %arg1: i32) -> (i32, i32, i32) {
    %c0_i32 = arith.constant 0 : i32
    %c0_i32_0 = arith.constant 0 : i32
    %c0_i32_1 = arith.constant 0 : i32
    return %arg1, %c0_i32, %c0_i32_0 : i32, i32, i32
  }
  func.func @transform_2(%arg0: i32, %arg1: i32) -> (i32, i32) {
    %c0_i32 = arith.constant 0 : i32
    %c0_i32_0 = arith.constant 0 : i32
    return %c0_i32, %arg0 : i32, i32
  }
  func.func @transform_3(%arg0: i32, %arg1: i32) -> (i32, i32, i32) {
    %c0_i32 = arith.constant 0 : i32
    %c0_i32_0 = arith.constant 0 : i32
    return %arg1, %c0_i32, %arg0 : i32, i32, i32
  }
}

</mosaic_0001>

<bundles_post_ra>
// kernel: tpu_custom_call.1
= control target key start
LH: loop header
LB: loop body
LE: loop exit
PB: predicated region body
PF: predicated region fallthrough
CT: control target
= control target key end

     0   :  { %v209_v2 = vmov 0   ;;  %s287_s0 = inlined_call_operand.vmem [shape: f32[8,8,128], index: 0, kind: input, shape index: {}]   ;;  %s288_s1 = inlined_call_operand.vmem [shape: f32[8,8,1], index: 1, kind: input, shape index: {}]   ;;  %s289_s2 = inlined_call_operand.vmem [shape: f32[1,128], index: 2, kind: input, shape index: {}]   ;;  %s290_s3 = inlined_call_operand.hbm [shape: f32[8,8,128], index: 3, kind: output, shape index: {}]  }
   0x1   :  { %v164_v0 = vld [vmem:[%s288_s1 + $0x10] sm:$0xff]  ;;  %v24_v1 = vld [vmem:[%s288_s1] sm:$0xff]  ;;  %180 = vset.pattern.permute.xlu1 %v209_v2  ;;  %179 = vset.pattern.permute.xlu0 %v209_v2 }
   0x2   :  { %59 = vperm.xlu1 %180, %v164_v0   ;;  %27 = vperm.xlu0 %179, %v24_v1   ;;  %v168_v3 = vld [vmem:[%s288_s1 + $0x20] sm:$0xff] }
   0x3   :  { %181 = vset.pattern.permute.xlu2 %v209_v2 }
   0x4   :  { %89 = vperm.xlu2 %181, %v168_v3  }
   0x5   :  { %8 = vsyncpa [#allocation4], 0  ;;  %v166_v4 = vld [vmem:[%s288_s1 + $0x18] sm:$0xff]  ;;  %v162_v5 = vld [vmem:[%s288_s1 + $0x8] sm:$0xff]  ;;  %s210_s17 = smov [#allocation3]   ;;  %s149_s21 = sshll.u32 %s290_s3, 4  ;;  %s150_s21 = int_to_ptr.hbm [resolvable:$true] %s149_s21 }
   0x6   :  { %v170_v6 = vld [vmem:[%s288_s1 + $0x28] sm:$0xff]  ;;  %v174_v7 = vld [vmem:[%s288_s1 + $0x38] sm:$0xff]  ;;  %v172_v8 = vld [vmem:[%s288_s1 + $0x30] sm:$0xff]  ;;  %s147_s18 = sshll.u32 %s210_s17, 4  ;;  %s212_s22 = smov 8   ;;  %s148_s18 = int_to_ptr.vmem [resolvable:$true] %s147_s18 }
   0x7   :  { %v161_v9 = vld [vmem:[%s287_s0 + $0x8] sm:$0xff]  ;;  %v22_v10 = vld [vmem:[%s287_s0] sm:$0xff]  ;;  %v163_v12 = vld [vmem:[%s287_s0 + $0x10] sm:$0xff] }
   0x8   :  { %v39_v11 = vadd.f32 %v161_v9, %v22_v10  ;;  %v165_v13 = vld [vmem:[%s287_s0 + $0x18] sm:$0xff]  ;;  %v167_v16 = vld [vmem:[%s287_s0 + $0x20] sm:$0xff]  ;;  %v169_v22 = vld [vmem:[%s287_s0 + $0x28] sm:$0xff] }
   0x9   :  { %v182_v17 = vld [vmem:[%s289_s2] ss:$0 sm:$0xff]  ;;  %v171_v37 = vld [vmem:[%s287_s0 + $0x30] sm:$0xff]  ;;  %v173_v45 = vld [vmem:[%s287_s0 + $0x38] sm:$0xff]  ;;  %s211_s0 = smov 128  }
   0xa   :  { %74 = vperm.xlu1 %180, %v166_v4   ;;  %44 = vperm.xlu0 %179, %v162_v5   ;;  %v54_v14 = vadd.f32 %v163_v12, %v39_v11  ;;  %v93_v19 = vmul.f32 %v182_v17, %v167_v16  ;;  %v108_v25 = vmul.f32 %v182_v17, %v169_v22 }
   0xb   :  { %v63_v29 = vmul.f32 %v182_v17, %v163_v12  ;;  %v34_v30 = vmul.f32 %v182_v17, %v22_v10  ;;  %v78_v38 = vmul.f32 %v182_v17, %v165_v13  ;;  %v48_v39 = vmul.f32 %v182_v17, %v161_v9 }
   0xc   :  { %104 = vperm.xlu2 %181, %v170_v6   ;;  %v69_v15 = vadd.f32 %v165_v13, %v54_v14  ;;  %v138_v49 = vmul.f32 %v182_v17, %v173_v45  ;;  %v123_v50 = vmul.f32 %v182_v17, %v171_v37 }
   0xe   :  { %v84_v18 = vadd.f32 %v167_v16, %v69_v15 }
  0x10   :  { %v99_v24 = vadd.f32 %v169_v22, %v84_v18 }
  0x12   :  { %134 = vperm.xlu1 %180, %v174_v7   ;;  %119 = vperm.xlu0 %179, %v172_v8   ;;  %v114_v44 = vadd.f32 %v171_v37, %v99_v24 }
  0x14   :  { %v129_v48 = vadd.f32 %v173_v45, %v114_v44 }
  0x5e   :  { %v90_v20 = vpop.permute.xlu2 %89 }
  0x5f   :  { %v92_v21 = vmul.f32 %v90_v20, %v84_v18 }
  0x61   :  { %v94_v23 = vadd.f32 %v93_v19, %v92_v21 }
  0x63   :  { %96 = vst [vmem:[#allocation3 + $0x20] sm:$0xff] %v94_v23 }
  0x66   :  { %v105_v26 = vpop.permute.xlu2 %104 }
  0x67   :  { %v107_v27 = vmul.f32 %v105_v26, %v99_v24 }
  0x69   :  { %v109_v28 = vadd.f32 %v108_v25, %v107_v27 }
  0x6b   :  { %111 = vst [vmem:[#allocation3 + $0x28] sm:$0xff] %v109_v28 }
  0x74   :  { %v60_v31 = vpop.permute.xlu1 %59  ;;  %v28_v32 = vpop.permute.xlu0 %27 }
  0x75   :  { %v62_v33 = vmul.f32 %v60_v31, %v54_v14  ;;  %v30_v34 = vmul.f32 %v28_v32, %v22_v10 }
  0x77   :  { %v64_v35 = vadd.f32 %v63_v29, %v62_v33  ;;  %v35_v36 = vadd.f32 %v34_v30, %v30_v34 }
  0x79   :  { %66 = vst [vmem:[#allocation3 + $0x10] sm:$0xff] %v64_v35 }
  0x7a   :  { %36 = vst [vmem:[#allocation3] sm:$0xff] %v35_v36 }
  0x7c   :  { %v75_v40 = vpop.permute.xlu1 %74  ;;  %v45_v41 = vpop.permute.xlu0 %44 }
  0x7d   :  { %v77_v42 = vmul.f32 %v75_v40, %v69_v15  ;;  %v47_v43 = vmul.f32 %v45_v41, %v39_v11 }
  0x7f   :  { %v79_v46 = vadd.f32 %v78_v38, %v77_v42  ;;  %v49_v47 = vadd.f32 %v48_v39, %v47_v43 }
  0x81   :  { %81 = vst [vmem:[#allocation3 + $0x18] sm:$0xff] %v79_v46 }
  0x82   :  { %51 = vst [vmem:[#allocation3 + $0x8] sm:$0xff] %v49_v47 }
  0x84   :  { %v135_v51 = vpop.permute.xlu1 %134  ;;  %v120_v52 = vpop.permute.xlu0 %119 }
  0x85   :  { %v137_v53 = vmul.f32 %v135_v51, %v129_v48  ;;  %v122_v54 = vmul.f32 %v120_v52, %v114_v44 }
  0x87   :  { %v139_v55 = vadd.f32 %v138_v49, %v137_v53  ;;  %v124_v56 = vadd.f32 %v123_v50, %v122_v54 }
  0x89   :  { %141 = vst [vmem:[#allocation3 + $0x38] sm:$0xff] %v139_v55 }
  0x8a   :  { %126 = vst [vmem:[#allocation3 + $0x30] sm:$0xff] %v124_v56 }
  0x8b   :  { %155 = dma.vmem_to_hbm [thread:$0]  %s148_s18, 1024, %s150_s21, [#allocation4], %s211_s0, %s211_s0, %s212_s22  }
  0x8c   :  { %207 = dma.done.wait [#allocation4], 1024  }
  0x8d   :  { %208 = vsyncadd [#allocation4], 4294966272 }
  0x8e   :  { %160 = vsyncpa [#allocation4], 1 }

</bundles_post_ra>
